<compile_context>
chip_gen: v7x
topology: tpu7x:2x2x1
jax: 0.10.0
libtpu: 0.0.40
codegen_flags: <defaults>
</compile_context>

<pallas_src>
import functools
import math

import jax
import jax.numpy as jnp
import numpy as np
from jax.experimental import pallas as pl
from jax.experimental.pallas import tpu as pltpu

_LN_EPS = 1e-5
_REF_PRECISION = jax.lax.Precision.HIGHEST   # reference (ground-truth) path only


# ---------------------------------------------------------------------------
# Helpers
# ---------------------------------------------------------------------------
def _mosaic_params(semantics, weight_bytes=0):
    kwargs = {"dimension_semantics": semantics}
    if weight_bytes > (8 << 20):
        # Only raise the scoped-VMEM limit when resident weights are large.
        # TODO(synk): on v7x (64 MiB physical VMEM) prefer bf16 weights or an
        # extra "arbitrary" d_ff grid axis instead of a large scoped limit.
        kwargs["vmem_limit_bytes"] = int(min(4 * weight_bytes + (16 << 20), 100 << 20))
    return pltpu.CompilerParams(**kwargs)


def _row_tile(rows):
    """Row tile for the fused row-wise kernels (mem-bound sweet spot ~256-512)."""
    if rows <= 512:
        return rows                       # full dim -> always BlockSpec-legal
    for t in (512, 256, 128):
        if rows % t == 0:
            return t
    return 512                            # ragged tail: Pallas clips boundary block


# ---------------------------------------------------------------------------
# Pallas kernels
# ---------------------------------------------------------------------------
def _qkv_proj_kernel(x_ref, w_ref, b_ref, q_ref, k_ref, v_ref, *, d_model):
    """Fused QKV projection: one matmul against concatenated weights."""
    y = jax.lax.dot_general(
        x_ref[...], w_ref[...],
        dimension_numbers=(((1,), (0,)), ((), ())),
        preferred_element_type=jnp.float32,
    ) + b_ref[...]
    y = y.astype(q_ref.dtype)
    q_ref[...] = y[:, 0:d_model]
    k_ref[...] = y[:, d_model:2 * d_model]
    v_ref[...] = y[:, 2 * d_model:3 * d_model]


def _attn_kernel(q_ref, k_ref, v_ref, kpad_ref, ctx_ref, attn_ref,
                 *, n_heads, d_k, scale):
    """One (batch, q-tile): all heads of scaled-dot-product attention.

    Q/K/V arrive lane-dense as (tq, d_model) / (Lk, d_model); heads are split
    with static lane slices in-kernel. ctx is written lane-dense (tq, d_model).
    """
    masked = kpad_ref[0] != 0                     # (1, Lk) key-pad indicator
    q = q_ref[0]                                  # (tq, Dm)
    k = k_ref[0]                                  # (Lk, Dm)
    v = v_ref[0]                                  # (Lk, Dm)

    ctx_parts = []
    for h in range(n_heads):
        sl = slice(h * d_k, (h + 1) * d_k)
        qh = q[:, sl] * scale                     # scale folded into Q (Python float)
        kh = k[:, sl]
        vh = v[:, sl]

        # scores = (Q/sqrt(dk)) @ K^T : contraction over the last dims.
        s = jax.lax.dot_general(
            qh, kh,
            dimension_numbers=(((1,), (1,)), ((), ())),
            preferred_element_type=jnp.float32,
        )                                          # (tq, Lk) f32
        s = jnp.where(masked, -1e9, s)

        m = jnp.max(s, axis=-1, keepdims=True)
        e = jnp.exp(s - m)
        denom = jnp.sum(e, axis=-1, keepdims=True)
        p = e * pl.reciprocal(denom, approx=True)  # EUP reciprocal, VPU multiply

        attn_ref[0, h] = p.astype(attn_ref.dtype)
        ctx_parts.append(
            jnp.dot(p.astype(vh.dtype), vh, preferred_element_type=jnp.float32))

    ctx = jnp.concatenate(ctx_parts, axis=-1)      # (tq, Dm) lane-dense
    ctx_ref[0] = ctx.astype(ctx_ref.dtype)


def _proj_add_ln_kernel(x_ref, w_ref, b_ref, res_ref, g_ref, beta_ref, o_ref):
    """out = LayerNorm(x @ W + b + residual)."""
    y = jax.lax.dot_general(
        x_ref[...], w_ref[...],
        dimension_numbers=(((1,), (0,)), ((), ())),
        preferred_element_type=jnp.float32,
    ) + b_ref[...]
    y = y + res_ref[...].astype(jnp.float32)
    mu = jnp.mean(y, axis=-1, keepdims=True)
    var = jnp.mean(jnp.square(y - mu), axis=-1, keepdims=True)
    yn = (y - mu) * jax.lax.rsqrt(var + _LN_EPS)
    o_ref[...] = (yn * g_ref[...] + beta_ref[...]).astype(o_ref.dtype)


def _ffn_add_ln_kernel(x_ref, w1_ref, b1_ref, w2_ref, b2_ref, g_ref, beta_ref, o_ref):
    """out = LayerNorm(relu(x @ W1 + b1) @ W2 + b2 + x)."""
    x = x_ref[...]
    h = jax.lax.dot_general(
        x, w1_ref[...],
        dimension_numbers=(((1,), (0,)), ((), ())),
        preferred_element_type=jnp.float32,
    ) + b1_ref[...]
    h = jnp.maximum(h, 0.0)
    y = jax.lax.dot_general(
        h.astype(w2_ref.dtype), w2_ref[...],
        dimension_numbers=(((1,), (0,)), ((), ())),
        preferred_element_type=jnp.float32,
    ) + b2_ref[...]
    y = y + x.astype(jnp.float32)
    mu = jnp.mean(y, axis=-1, keepdims=True)
    var = jnp.mean(jnp.square(y - mu), axis=-1, keepdims=True)
    yn = (y - mu) * jax.lax.rsqrt(var + _LN_EPS)
    o_ref[...] = (yn * g_ref[...] + beta_ref[...]).astype(o_ref.dtype)


# ---------------------------------------------------------------------------
# Pallas wrappers
# ---------------------------------------------------------------------------
def qkv_projection(x, w_qkv, b_qkv):
    """x: (B, L, D); w_qkv: (D, 3D); returns q, k, v each (B, L, D) lane-dense."""
    B, L, Dm = x.shape
    rows = B * L
    tile = _row_tile(rows)
    grid = (pl.cdiv(rows, tile),)
    kernel = functools.partial(_qkv_proj_kernel, d_model=Dm)
    q, k, v = pl.pallas_call(
        kernel,
        out_shape=tuple(jax.ShapeDtypeStruct((rows, Dm), x.dtype) for _ in range(3)),
        grid_spec=pltpu.PrefetchScalarGridSpec(
            num_scalar_prefetch=0,
            grid=grid,
            in_specs=[
                pl.BlockSpec((tile, Dm), lambda r: (r, 0)),
                pl.BlockSpec((Dm, 3 * Dm), lambda r: (0, 0)),
                pl.BlockSpec((1, 3 * Dm), lambda r: (0, 0)),
            ],
            out_specs=tuple(pl.BlockSpec((tile, Dm), lambda r: (r, 0))
                            for _ in range(3)),
        ),
        compiler_params=_mosaic_params(
            ("parallel",),
            weight_bytes=int(w_qkv.size) * w_qkv.dtype.itemsize),
    )(x.reshape(rows, Dm), w_qkv, b_qkv.reshape(1, 3 * Dm))
    return q.reshape(B, L, Dm), k.reshape(B, L, Dm), v.reshape(B, L, Dm)


def mha_attention(q, k, v, key_pad, d_k, n_heads):
    """q,k,v: (B, L, d_model) lane-dense; key_pad: (B, 1, Lk) int32 (nonzero=PAD)."""
    B, Lq, Dm = q.shape
    Lk = k.shape[1]
    scale = 1.0 / math.sqrt(d_k)        # Python float -> compile-time constant
    tq = min(Lq, 128)
    nq = pl.cdiv(Lq, tq)

    kernel = functools.partial(_attn_kernel, n_heads=n_heads, d_k=d_k, scale=scale)
    ctx, attn = pl.pallas_call(
        kernel,
        out_shape=(
            jax.ShapeDtypeStruct((B, Lq, Dm), q.dtype),
            # TODO(synk): drop / bf16 this O(L^2) output and go flash-style
            # (online softmax over an "arbitrary" Lk axis) for long sequences.
            jax.ShapeDtypeStruct((B, n_heads, Lq, Lk), q.dtype),
        ),
        grid_spec=pltpu.PrefetchScalarGridSpec(
            num_scalar_prefetch=0,
            grid=(B, nq),
            in_specs=[
                pl.BlockSpec((1, tq, Dm), lambda b, qi: (b, qi, 0)),
                pl.BlockSpec((1, Lk, Dm), lambda b, qi: (b, 0, 0)),
                pl.BlockSpec((1, Lk, Dm), lambda b, qi: (b, 0, 0)),
                pl.BlockSpec((1, 1, Lk), lambda b, qi: (b, 0, 0)),
            ],
            out_specs=(
                pl.BlockSpec((1, tq, Dm), lambda b, qi: (b, qi, 0)),
                pl.BlockSpec((1, n_heads, tq, Lk), lambda b, qi: (b, 0, qi, 0)),
            ),
        ),
        compiler_params=pltpu.CompilerParams(
            dimension_semantics=("parallel", "parallel")),
    )(q, k, v, key_pad)
    return ctx, attn


def proj_add_layernorm(x, w, b, residual, gamma, beta):
    """LayerNorm(x @ w + b + residual), fused; x: (B, L, Din)."""
    B, L, Din = x.shape
    Dout = w.shape[1]
    rows = B * L
    tile = _row_tile(rows)
    grid = (pl.cdiv(rows, tile),)
    out = pl.pallas_call(
        _proj_add_ln_kernel,
        out_shape=jax.ShapeDtypeStruct((rows, Dout), x.dtype),
        grid_spec=pltpu.PrefetchScalarGridSpec(
            num_scalar_prefetch=0,
            grid=grid,
            in_specs=[
                pl.BlockSpec((tile, Din), lambda r: (r, 0)),
                pl.BlockSpec((Din, Dout), lambda r: (0, 0)),
                pl.BlockSpec((1, Dout), lambda r: (0, 0)),
                pl.BlockSpec((tile, Dout), lambda r: (r, 0)),
                pl.BlockSpec((1, Dout), lambda r: (0, 0)),
                pl.BlockSpec((1, Dout), lambda r: (0, 0)),
            ],
            out_specs=pl.BlockSpec((tile, Dout), lambda r: (r, 0)),
        ),
        compiler_params=_mosaic_params(
            ("parallel",), weight_bytes=int(w.size) * w.dtype.itemsize),
    )(x.reshape(rows, Din), w, b.reshape(1, Dout),
      residual.reshape(rows, Dout), gamma.reshape(1, Dout), beta.reshape(1, Dout))
    return out.reshape(B, L, Dout)


def ffn_add_layernorm(x, w1, b1, w2, b2, gamma, beta):
    """LayerNorm(relu(x @ w1 + b1) @ w2 + b2 + x), fused; x: (B, L, D)."""
    B, L, D = x.shape
    d_ff = w1.shape[1]
    rows = B * L
    tile = _row_tile(rows)
    grid = (pl.cdiv(rows, tile),)
    wbytes = (int(w1.size) + int(w2.size)) * w1.dtype.itemsize
    out = pl.pallas_call(
        _ffn_add_ln_kernel,
        out_shape=jax.ShapeDtypeStruct((rows, D), x.dtype),
        grid_spec=pltpu.PrefetchScalarGridSpec(
            num_scalar_prefetch=0,
            grid=grid,
            in_specs=[
                pl.BlockSpec((tile, D), lambda r: (r, 0)),
                pl.BlockSpec((D, d_ff), lambda r: (0, 0)),
                pl.BlockSpec((1, d_ff), lambda r: (0, 0)),
                pl.BlockSpec((d_ff, D), lambda r: (0, 0)),
                pl.BlockSpec((1, D), lambda r: (0, 0)),
                pl.BlockSpec((1, D), lambda r: (0, 0)),
                pl.BlockSpec((1, D), lambda r: (0, 0)),
            ],
            out_specs=pl.BlockSpec((tile, D), lambda r: (r, 0)),
        ),
        compiler_params=_mosaic_params(("parallel",), weight_bytes=wbytes),
    )(x.reshape(rows, D), w1, b1.reshape(1, d_ff), w2, b2.reshape(1, D),
      gamma.reshape(1, D), beta.reshape(1, D))
    return out.reshape(B, L, D)


# ---------------------------------------------------------------------------
# Pure-JAX pieces (wrapper + reference path)
# ---------------------------------------------------------------------------
def _positional_encoding(max_len, d_model):
    pe = np.zeros((max_len, d_model), dtype=np.float32)
    position = np.arange(max_len, dtype=np.float32)[:, None]
    div_term = np.exp(np.arange(0, d_model, 2, dtype=np.float32)
                      * -(math.log(10000.0) / d_model))
    pe[:, 0::2] = np.sin(position * div_term)
    pe[:, 1::2] = np.cos(position * div_term)
    return jnp.asarray(pe)


def _linear(x, w, b):
    return jnp.einsum("bld,df->blf", x, w, precision=_REF_PRECISION) + b


def _split_heads(x, n_heads):
    B, L, D = x.shape
    return x.reshape(B, L, n_heads, D // n_heads).transpose(0, 2, 1, 3)


def _layer_norm(x, gamma, beta):
    mu = jnp.mean(x, axis=-1, keepdims=True)
    var = jnp.mean(jnp.square(x - mu), axis=-1, keepdims=True)
    return (x - mu) * jax.lax.rsqrt(var + _LN_EPS) * gamma + beta


def _attention_reference(Q, K, V, key_pad, d_k):
    scores = jnp.einsum("bhqd,bhkd->bhqk", Q, K,
                        precision=_REF_PRECISION) / math.sqrt(d_k)
    scores = jnp.where(key_pad[:, :, None, :] != 0, -1e9, scores)
    attn = jax.nn.softmax(scores, axis=-1)
    ctx = jnp.einsum("bhqk,bhkd->bhqd", attn, V, precision=_REF_PRECISION)
    return ctx, attn


def encoder_forward(params, enc_inputs, pad_idx, n_heads, use_pallas=True):
    """Matches PyTorch Encoder.forward: returns (enc_outputs, [attn per layer])."""
    emb = params["emb"]
    pe = params["pe"]
    d_model = emb.shape[1]
    d_k = d_model // n_heads
    B, L = enc_inputs.shape

    # TODO(synk): embedding-table gather + positional-encoding slice stay in
    # plain JAX (tiny data-dependent gather; no clean rectangular BlockSpec).
    x = emb[enc_inputs] + pe[:L][None, :, :]

    # get_attn_pad_mask: per-batch key-pad indicator, expanded in-kernel.
    key_pad = (enc_inputs == pad_idx).astype(jnp.int32).reshape(B, 1, L)

    attns = []
    for layer in params["layers"]:
        residual = x
        if use_pallas:
            w_qkv = jnp.concatenate([layer["W_Q"], layer["W_K"], layer["W_V"]], axis=1)
            b_qkv = jnp.concatenate([layer["b_Q"], layer["b_K"], layer["b_V"]], axis=0)
            q, k, v = qkv_projection(x, w_qkv, b_qkv)
            ctx, attn = mha_attention(q, k, v, key_pad, d_k, n_heads)
            attns.append(attn)
            # ctx already (B, L, d_model) lane-dense -> no transpose/reshape.
            x = proj_add_layernorm(ctx, layer["W_O"], layer["b_O"], residual,
                                   layer["ln1_g"], layer["ln1_b"])
            x = ffn_add_layernorm(x, layer["W_1"], layer["b_1"],
                                  layer["W_2"], layer["b_2"],
                                  layer["ln2_g"], layer["ln2_b"])
        else:
            q_s = _split_heads(_linear(x, layer["W_Q"], layer["b_Q"]), n_heads)
            k_s = _split_heads(_linear(x, layer["W_K"], layer["b_K"]), n_heads)
            v_s = _split_heads(_linear(x, layer["W_V"], layer["b_V"]), n_heads)
            ctx, attn = _attention_reference(q_s, k_s, v_s, key_pad, d_k)
            attns.append(attn)
            ctx = ctx.transpose(0, 2, 1, 3).reshape(B, L, n_heads * d_k)
            out = _linear(ctx, layer["W_O"], layer["b_O"])
            x = _layer_norm(out + residual, layer["ln1_g"], layer["ln1_b"])
            h = jnp.maximum(_linear(x, layer["W_1"], layer["b_1"]), 0.0)
            out2 = _linear(h, layer["W_2"], layer["b_2"])
            x = _layer_norm(out2 + x, layer["ln2_g"], layer["ln2_b"])
    return x, attns


def init_params(key, vocab_size, d_model, n_heads, n_layers, d_ff, max_len):
    d_k = d_model // n_heads
    keys = jax.random.split(key, n_layers + 1)
    params = {
        "emb": 0.5 * jax.random.normal(keys[0], (vocab_size, d_model), jnp.float32),
        "pe": _positional_encoding(max_len, d_model),
        "layers": [],
    }
    s_in = 1.0 / math.sqrt(d_model)
    s_ff = 1.0 / math.sqrt(d_ff)
    for i in range(n_layers):
        lk = jax.random.split(keys[i + 1], 6)
        layer = {
            "W_Q": s_in * jax.random.normal(lk[0], (d_model, n_heads * d_k), jnp.float32),
            "b_Q": jnp.zeros((n_heads * d_k,), jnp.float32),
            "W_K": s_in * jax.random.normal(lk[1], (d_model, n_heads * d_k), jnp.float32),
            "b_K": jnp.zeros((n_heads * d_k,), jnp.float32),
            "W_V": s_in * jax.random.normal(lk[2], (d_model, n_heads * d_k), jnp.float32),
            "b_V": jnp.zeros((n_heads * d_k,), jnp.float32),
            "W_O": s_in * jax.random.normal(lk[3], (n_heads * d_k, d_model), jnp.float32),
            "b_O": jnp.zeros((d_model,), jnp.float32),
            "ln1_g": jnp.ones((d_model,), jnp.float32),
            "ln1_b": jnp.zeros((d_model,), jnp.float32),
            "W_1": s_in * jax.random.normal(lk[4], (d_model, d_ff), jnp.float32),
            "b_1": jnp.zeros((d_ff,), jnp.float32),
            "W_2": s_ff * jax.random.normal(lk[5], (d_ff, d_model), jnp.float32),
            "b_2": jnp.zeros((d_model,), jnp.float32),
            "ln2_g": jnp.ones((d_model,), jnp.float32),
            "ln2_b": jnp.zeros((d_model,), jnp.float32),
        }
        params["layers"].append(layer)
    return params


if __name__ == "__main__":
    B, L = 2, 8
    vocab_size = 32
    d_model = 32
    n_heads = 2
    n_layers = 2
    d_ff = 64
    max_len = 16
    pad_idx = 0

    root = jax.random.PRNGKey(0)
    k_tok, k_par = jax.random.split(root)
    enc_inputs = jax.random.randint(k_tok, (B, L), 1, vocab_size, dtype=jnp.int32)
    enc_inputs = enc_inputs.at[1, -2:].set(pad_idx)   # pad tail of 2nd sequence

    params = init_params(k_par, vocab_size, d_model, n_heads, n_layers, d_ff, max_len)

    out, attns = encoder_forward(params, enc_inputs, pad_idx, n_heads, use_pallas=True)
    jax.block_until_ready((out, attns))

    out_ref, attns_ref = encoder_forward(params, enc_inputs, pad_idx, n_heads,
                                         use_pallas=False)
    # Kernels run MXU default precision (f32 accumulation) vs a HIGHEST-precision
    # JAX reference, so tolerances are looser than bit-level.
    assert jnp.allclose(out, out_ref, atol=5e-2, rtol=5e-2), \
        float(jnp.max(jnp.abs(out - out_ref)))
    for a, a_ref in zip(attns, attns_ref):
        assert jnp.allclose(a, a_ref, atol=3e-2, rtol=3e-2), \
            float(jnp.max(jnp.abs(a - a_ref)))

    print("KERNEL_OK")
</pallas_src>

<mosaic_0001>
module attributes {stable_mosaic.version = 11 : i64} {
  func.func @_qkv_proj_kernel(%arg0: i32, %arg1: memref<16x32xf32, #tpu.memory_space<vmem>>, %arg2: memref<32x96xf32, #tpu.memory_space<vmem>>, %arg3: memref<1x96xf32, #tpu.memory_space<vmem>>, %arg4: memref<16x32xf32, #tpu.memory_space<vmem>>, %arg5: memref<16x32xf32, #tpu.memory_space<vmem>>, %arg6: memref<16x32xf32, #tpu.memory_space<vmem>>) attributes {dimension_semantics = [#tpu.dimension_semantics<parallel>], iteration_bounds = array<i64: 1>, scalar_prefetch = 0 : i64, scratch_operands = 0 : i64, tpu.core_type = #tpu.core_type<tc>, window_params = [{transform_indices = @transform_0, window_bounds = array<i64: 16, 32>}, {pipeline_mode = #tpu.pipeline_mode<synchronous>, transform_indices = @transform_1, window_bounds = array<i64: 32, 96>}, {pipeline_mode = #tpu.pipeline_mode<synchronous>, transform_indices = @transform_2, window_bounds = array<i64: 1, 96>}, {transform_indices = @transform_3, window_bounds = array<i64: 16, 32>}, {transform_indices = @transform_4, window_bounds = array<i64: 16, 32>}, {transform_indices = @transform_5, window_bounds = array<i64: 16, 32>}]} {
    %c0 = arith.constant 0 : index
    %c0_0 = arith.constant 0 : index
    %0 = vector.load %arg1[%c0, %c0_0] : memref<16x32xf32, #tpu.memory_space<vmem>>, vector<16x32xf32>
    %c0_1 = arith.constant 0 : index
    %c0_2 = arith.constant 0 : index
    %1 = vector.load %arg2[%c0_1, %c0_2] : memref<32x96xf32, #tpu.memory_space<vmem>>, vector<32x96xf32>
    %cst = arith.constant dense<0.000000e+00> : vector<16x96xf32>
    %2 = tpu.matmul %0, %1, %cst {dimension_numbers = #tpu.dot_dimension_numbers<[1], [0], [0], [1], [0, 0, 1, 1], [], []>} : vector<16x32xf32>, vector<32x96xf32>, vector<16x96xf32> -> vector<16x96xf32>
    %c0_3 = arith.constant 0 : index
    %c0_4 = arith.constant 0 : index
    %3 = vector.load %arg3[%c0_3, %c0_4] : memref<1x96xf32, #tpu.memory_space<vmem>>, vector<1x96xf32>
    %4 = vector.broadcast %3 : vector<1x96xf32> to vector<16x96xf32>
    %5 = arith.addf %2, %4 : vector<16x96xf32>
    %6 = vector.extract_strided_slice %5 {offsets = [0, 0], sizes = [16, 32], strides = [1, 1]} : vector<16x96xf32> to vector<16x32xf32>
    %c0_5 = arith.constant 0 : index
    %c0_6 = arith.constant 0 : index
    %7 = vector.load %arg4[%c0_5, %c0_6] : memref<16x32xf32, #tpu.memory_space<vmem>>, vector<16x32xf32>
    tpu.vector_store %arg4[%c0_5, %c0_6], %6 {strides = array<i32>} : memref<16x32xf32, #tpu.memory_space<vmem>>, vector<16x32xf32>,
    %8 = vector.extract_strided_slice %5 {offsets = [0, 32], sizes = [16, 32], strides = [1, 1]} : vector<16x96xf32> to vector<16x32xf32>
    %c0_7 = arith.constant 0 : index
    %c0_8 = arith.constant 0 : index
    %9 = vector.load %arg5[%c0_7, %c0_8] : memref<16x32xf32, #tpu.memory_space<vmem>>, vector<16x32xf32>
    tpu.vector_store %arg5[%c0_7, %c0_8], %8 {strides = array<i32>} : memref<16x32xf32, #tpu.memory_space<vmem>>, vector<16x32xf32>,
    %10 = vector.extract_strided_slice %5 {offsets = [0, 64], sizes = [16, 32], strides = [1, 1]} : vector<16x96xf32> to vector<16x32xf32>
    %c0_9 = arith.constant 0 : index
    %c0_10 = arith.constant 0 : index
    %11 = vector.load %arg6[%c0_9, %c0_10] : memref<16x32xf32, #tpu.memory_space<vmem>>, vector<16x32xf32>
    tpu.vector_store %arg6[%c0_9, %c0_10], %10 {strides = array<i32>} : memref<16x32xf32, #tpu.memory_space<vmem>>, vector<16x32xf32>,
    return
  }
  func.func @transform_0(%arg0: i32) -> (i32, i32) {
    %c0_i32 = arith.constant 0 : i32
    %c0_i32_0 = arith.constant 0 : i32
    return %arg0, %c0_i32 : i32, i32
  }
  func.func @transform_1(%arg0: i32) -> (i32, i32) {
    %c0_i32 = arith.constant 0 : i32
    %c0_i32_0 = arith.constant 0 : i32
    %c0_i32_1 = arith.constant 0 : i32
    return %c0_i32, %c0_i32_0 : i32, i32
  }
  func.func @transform_2(%arg0: i32) -> (i32, i32) {
    %c0_i32 = arith.constant 0 : i32
    %c0_i32_0 = arith.constant 0 : i32
    %c0_i32_1 = arith.constant 0 : i32
    return %c0_i32, %c0_i32_0 : i32, i32
  }
  func.func @transform_3(%arg0: i32) -> (i32, i32) {
    %c0_i32 = arith.constant 0 : i32
    %c0_i32_0 = arith.constant 0 : i32
    return %arg0, %c0_i32 : i32, i32
  }
  func.func @transform_4(%arg0: i32) -> (i32, i32) {
    %c0_i32 = arith.constant 0 : i32
    %c0_i32_0 = arith.constant 0 : i32
    return %arg0, %c0_i32 : i32, i32
  }
  func.func @transform_5(%arg0: i32) -> (i32, i32) {
    %c0_i32 = arith.constant 0 : i32
    %c0_i32_0 = arith.constant 0 : i32
    return %arg0, %c0_i32 : i32, i32
  }
}

</mosaic_0001>

<bundles_post_ra>
// kernel: tpu_custom_call.1
= control target key start
LH: loop header
LB: loop body
LE: loop exit
PB: predicated region body
PF: predicated region fallthrough
CT: control target
= control target key end

     0   :  { %11 = vsyncpa [#allocation3], 0  ;;  %s498_s0 = inlined_call_operand.hbm [shape: f32[16,32], index: 0, kind: input, shape index: {}]   ;;  %s499_s1 = inlined_call_operand.hbm [shape: f32[32,96], index: 1, kind: input, shape index: {}]   ;;  %s500_s2 = inlined_call_operand.vmem [shape: f32[1,96], index: 2, kind: input, shape index: {}]   ;;  %s501_s3 = inlined_call_operand.hbm [shape: f32[16,32], index: 3, kind: output, shape index: {0}]   ;;  %s502_s4 = inlined_call_operand.hbm [shape: f32[16,32], index: 4, kind: output, shape index: {1}]   ;;  %s503_s5 = inlined_call_operand.hbm [shape: f32[16,32], index: 5, kind: output, shape index: {2}]  }
   0x1   :  { %12 = vsyncpa [#allocation6], 0 }
   0x2   :  { %13 = vsyncpa [#allocation4], 0 }
   0x3   :  { %14 = vsyncpa [#allocation9], 0  ;;  %s366_s18 = smov [#allocation2]   ;;  %s248_s22 = scalar_lea.hbm %s498_s0, 256 }
   0x4   :  { %s20_s19 = sshll.u32 %s366_s18, 4  ;;  %p249_p0 = scmp.ne.s32.totalorder %s498_s0, %s248_s22  ;;  %s21_s19 = int_to_ptr.vmem [resolvable:$true] %s20_s19 }
   0x5   :  { %p252_p1 = scmp.lt.u32.totalorder %s248_s22, %s498_s0 }
   0x7   :  { %p254_p2 = pnand %p252_p1, %p249_p0 }
   0x9   :  { %257 = shalt.err (!%p254_p2)
}
   0xa   :  { %s258_s27 = scalar_lea.vmem %s21_s19, 256  ;;  %p263_p4 = scmp.lt.s32.totalorder %s21_s19, %s21_s19 }
   0xb   :  { %p259_p3 = scmp.ne.s32.totalorder %s21_s19, %s258_s27  ;;  %p264_p5 = scmp.lt.s32.totalorder %s258_s27, %s258_s27 }
   0xd   :  { %p265_p6 = por %p264_p5, %p263_p4 }
   0xf   :  { %p266_p7 = pnand %p265_p6, %p259_p3 }
  0x11   :  { %269 = shalt.err (!%p266_p7)
}
  0x12   :  { %s367_s28 = smov 128   ;;  %s368_s29 = smov 8  }
  0x13   :  { %26 = dma.hbm_to_vmem [thread:$0]  %s498_s0, 256, %s21_s19, [#allocation3], %s367_s28, %s367_s28, %s368_s29  }
  0x14   :  { %s369_s7 = smov [#allocation5]   ;;  %s270_s11 = scalar_lea.hbm %s499_s1, 512 }
  0x15   :  { %s32_s8 = sshll.u32 %s369_s7, 4  ;;  %p271_p8 = scmp.ne.s32.totalorder %s499_s1, %s270_s11  ;;  %s33_s8 = int_to_ptr.vmem [resolvable:$true] %s32_s8 }
  0x16   :  { %p274_p9 = scmp.lt.u32.totalorder %s270_s11, %s499_s1 }
  0x18   :  { %p276_p10 = pnand %p274_p9, %p271_p8 }
  0x1a   :  { %279 = shalt.err (!%p276_p10)
}
  0x1b   :  { %s280_s16 = scalar_lea.vmem %s33_s8, 512  ;;  %p285_p12 = scmp.lt.s32.totalorder %s33_s8, %s33_s8 }
  0x1c   :  { %p281_p11 = scmp.ne.s32.totalorder %s33_s8, %s280_s16  ;;  %p286_p13 = scmp.lt.s32.totalorder %s280_s16, %s280_s16 }
  0x1e   :  { %p287_p0 = por %p286_p13, %p285_p12 }
  0x20   :  { %p288_p1 = pnand %p287_p0, %p281_p11 }
  0x22   :  { %291 = shalt.err (!%p288_p1)
}
  0x23   :  { %38 = dma.hbm_to_vmem [thread:$0]  %s499_s1, 512, %s33_s8, [#allocation6], %s367_s28, %s367_s28, %s368_s29  }
  0x24   :  { %358 = dma.done.wait [#allocation3], 256  }
  0x25   :  { %359 = vsyncadd [#allocation3], 4294967040 }
  0x26   :  { %360 = dma.done.wait [#allocation6], 512  }
  0x27   :  { %361 = vsyncadd [#allocation6], 4294966784  ;;  %vm60_vm0 = vcmask 261120   ;;  %v49_v0 = vld [vmem:[#allocation5] sm:$0xff]  ;;  %v50_v1 = vld [vmem:[#allocation5 + $0x8] sm:$0xff]  ;;  %s370_s19 = smov [#allocation7]  }
  0x28   :  { %v51_v2 = vld [vmem:[#allocation5 + $0x10] sm:$0xff]  ;;  %v231_v3 = vpack.c.bf16 %v50_v1, %v49_v0  ;;  %v52_v4 = vld [vmem:[#allocation5 + $0x18] sm:$0xff]  ;;  %s167_s20 = sshll.u32 %s370_s19, 4  ;;  %s371_s21 = smov 64   ;;  %s168_s20 = int_to_ptr.vmem [resolvable:$true] %s167_s20 }
  0x29   :  { %v47_v5 = vld [vmem:[#allocation2] sm:$0xff]  ;;  %v235_v6 = vpack.c.bf16 %v52_v4, %v51_v2  ;;  %v48_v7 = vld [vmem:[#allocation2 + $0x8] sm:$0xff]  ;;  %s372_s22 = smov 96   ;;  %s292_s23 = scalar_lea.vmem %s168_s20, 256 }
  0x2a   :  { %228 = vmatprep.mubr.msk.f32.mxu0 %vm60_vm0, %v47_v5  ;;  %232 = vmatprep.subr.bf16.mxu0 %v231_v3  ;;  %v211_v8 = vld [vmem:[%s500_s2] ss:$0 sm:$0xff]  ;;  %p293_p2 = scmp.ne.s32.totalorder %s168_s20, %s292_s23  ;;  %p297_p3 = scmp.lt.s32.totalorder %s168_s20, %s168_s20 }
  0x2b   :  { %234 = vmatpush3.bf16.msra.mxu0 %v231_v3  ;;  %p298_p4 = scmp.lt.s32.totalorder %s292_s23, %s292_s23 }
  0x2c   :  { %236 = vmatprep.subr.bf16.mxu0 %v235_v6 }
  0x2d   :  { %p299_p5 = por %p298_p4, %p297_p3 }
  0x2f   :  { %238 = vmatpush3.bf16.msra.mxu0 %v235_v6  ;;  %p300_p6 = pnand %p299_p5, %p293_p2 }
  0x32   :  { %229 = vmatmul.mubr.msk.f32.vlgmr.msra.gmra.mrb[0].mxu0 %vm60_vm0, %v48_v7 }
 0x105   :  { %v230_v9 = vpop.f32.mrb[0].mxu0 }
 0x106   :  { %v139_v10 = vadd.f32 %v230_v9, %v211_v8  ;;  %v133_v11 = vpop.f32.mrb[1].mxu0 }
 0x107   :  { %v134_v12 = vadd.f32 %v211_v8, %v133_v11 }
 0x108   :  { %143 = vst.msk [vmem:[#allocation7 + $0x8] sm:$0xff] %vm60_vm0, %v139_v10 }
 0x109   :  { %142 = vst.msk [vmem:[#allocation7] sm:$0xff] %vm60_vm0, %v134_v12  ;;  %154 = vrot.lane.b32.xlu1 %v134_v12, %s371_s21  ;;  %146 = vrot.lane.b32.xlu0 %v134_v12, %s372_s22 }
 0x10a   :  { %303 = shalt.err (!%p300_p6)
}
 0x10b   :  { %s304_s25 = scalar_lea.hbm %s501_s3, 256 }
 0x10c   :  { %p305_p7 = scmp.ne.s32.totalorder %s501_s3, %s304_s25  ;;  %p308_p8 = scmp.lt.u32.totalorder %s304_s25, %s501_s3 }
 0x10e   :  { %p310_p9 = pnand %p308_p8, %p305_p7 }
 0x110   :  { %313 = shalt.err (!%p310_p9)
}
 0x111   :  { %173 = dma.vmem_to_hbm [thread:$0]  %s168_s20, 256, %s501_s3, [#allocation4], %s367_s28, %s367_s28, %s368_s29  }
 0x112   :  { %156 = vrot.lane.b32.xlu1 %v139_v10, %s371_s21  ;;  %148 = vrot.lane.b32.xlu0 %v139_v10, %s372_s22  ;;  %s373_s9 = smov [#allocation8]   ;;  %s374_s11 = smov [#allocation10]  }
 0x113   :  { %s179_s10 = sshll.u32 %s373_s9, 4  ;;  %s191_s12 = sshll.u32 %s374_s11, 4  ;;  %s180_s10 = int_to_ptr.vmem [resolvable:$true] %s179_s10  ;;  %s459_s12 = int_to_ptr.vmem [resolvable:$true] %s191_s12 }
 0x114   :  { %s314_s3 = scalar_lea.vmem %s180_s10, 256  ;;  %p319_p11 = scmp.lt.s32.totalorder %s180_s10, %s180_s10 }
 0x115   :  { %p315_p10 = scmp.ne.s32.totalorder %s180_s10, %s314_s3  ;;  %p320_p12 = scmp.lt.s32.totalorder %s314_s3, %s314_s3 }
 0x117   :  { %p321_p13 = por %p320_p12, %p319_p11 }
 0x119   :  { %p322_p0 = pnand %p321_p13, %p315_p10 }
 0x17b   :  { %v155_v13 = vpop.permute.xlu1 %154  ;;  %v147_v14 = vpop.permute.xlu0 %146 }
 0x17c   :  { %160 = vst.msk [vmem:[#allocation10] sm:$0xff] %vm60_vm0, %v155_v13  ;;  %152 = vst.msk [vmem:[#allocation8] sm:$0xff] %vm60_vm0, %v147_v14 }
 0x184   :  { %v157_v15 = vpop.permute.xlu1 %156  ;;  %v149_v16 = vpop.permute.xlu0 %148 }
 0x185   :  { %161 = vst.msk [vmem:[#allocation10 + $0x8] sm:$0xff] %vm60_vm0, %v157_v15  ;;  %153 = vst.msk [vmem:[#allocation8 + $0x8] sm:$0xff] %vm60_vm0, %v149_v16 }
 0x186   :  { %325 = shalt.err (!%p322_p0)
}
 0x187   :  { %s326_s15 = scalar_lea.hbm %s502_s4, 256 }
 0x188   :  { %p327_p1 = scmp.ne.s32.totalorder %s502_s4, %s326_s15  ;;  %p330_p2 = scmp.lt.u32.totalorder %s326_s15, %s502_s4 }
 0x18a   :  { %p332_p3 = pnand %p330_p2, %p327_p1 }
 0x18c   :  { %335 = shalt.err (!%p332_p3)
}
 0x18d   :  { %185 = dma.vmem_to_hbm [thread:$0]  %s180_s10, 256, %s502_s4, [#allocation9], %s367_s28, %s367_s28, %s368_s29  }
 0x18e   :  { %s336_s20 = scalar_lea.vmem %s459_s12, 256  ;;  %p341_p5 = scmp.lt.s32.totalorder %s459_s12, %s459_s12 }
 0x18f   :  { %p337_p4 = scmp.ne.s32.totalorder %s459_s12, %s336_s20  ;;  %p342_p6 = scmp.lt.s32.totalorder %s336_s20, %s336_s20 }
 0x191   :  { %p343_p7 = por %p342_p6, %p341_p5 }
 0x193   :  { %p344_p8 = pnand %p343_p7, %p337_p4 }
 0x195   :  { %347 = shalt.err (!%p344_p8)
}
 0x196   :  { %s348_s23 = scalar_lea.hbm %s503_s5, 256 }
 0x197   :  { %p349_p9 = scmp.ne.s32.totalorder %s503_s5, %s348_s23  ;;  %p352_p10 = scmp.lt.u32.totalorder %s348_s23, %s503_s5 }
 0x199   :  { %p354_p11 = pnand %p352_p10, %p349_p9 }
 0x19b   :  { %357 = shalt.err (!%p354_p11)
}
 0x19c   :  { %197 = dma.vmem_to_hbm [thread:$0]  %s459_s12, 256, %s503_s5, [#allocation9], %s367_s28, %s367_s28, %s368_s29  }
 0x19d   :  { %362 = dma.done.wait [#allocation4], 256  }
 0x19e   :  { %363 = vsyncadd [#allocation4], 4294967040 }
 0x19f   :  { %364 = dma.done.wait [#allocation9], 512  }
 0x1a0   :  { %365 = vsyncadd [#allocation9], 4294966784 }
 0x1a1   :  { %207 = vsyncpa [#allocation3], 1 }
 0x1a2   :  { %208 = vsyncpa [#allocation6], 1 }
 0x1a3   :  { %209 = vsyncpa [#allocation4], 1 }
 0x1a4   :  { %210 = vsyncpa [#allocation9], 1 }

</bundles_post_ra>
